<compile_context>
chip_gen: v7x
topology: tpu7x:2x2x1
jax: 0.10.0
libtpu: 0.0.40
codegen_flags: <defaults>
</compile_context>

<pallas_src>
import functools

import jax
import jax.numpy as jnp
from jax.experimental import pallas as pl
from jax.experimental.pallas import tpu as pltpu

_LANE = 128     # lane width: pad the output/feature axis to this for lane-dense stores
_SUBLANE = 8    # f32 sublane multiple for batch tiles


def _fused_linear_kernel(zx_ref, p_ref, o_ref):
    # zx_ref: (bm, emb+2) rows of [z | x | 1]
    # p_ref : (emb+2, out_pad) slab of [WzT ; wx_row ; bias]
    # One MXU contraction computes cat([x, z]) @ W^T + b for every row.
    o_ref[...] = jnp.dot(zx_ref[...], p_ref[...], preferred_element_type=jnp.float32)


def pack_unlinear_params(weight, bias):
    """One-time parameter prep (hoisted out of the per-call path).

    weight: (out_dim, 1 + emb_dim), bias: (out_dim,) -- nn.Linear convention.
    Column 0 of `weight` MUST be the scalar-`input` feature, because the module
    concatenates [input, z] in that order.

    Returns an (emb_dim + 2, out_pad) f32 slab:
        rows [0, emb)  = W_z^T
        row   emb      = w_x (scalar-input weight row)
        row   emb + 1  = bias
    with the lane axis zero-padded to a multiple of 128.
    """
    out_dim, total_in = weight.shape
    assert total_in >= 2, (
        "expected weight with in_dim(=1) + emb_dim input features; column 0 must "
        "be the scalar-`input` feature (cat order is [x, z])")
    assert bias.shape == (out_dim,)
    wzT = weight[:, 1:].T                     # (emb_dim, out_dim)
    wx = weight[:, :1].T                      # (1, out_dim)
    b = bias.reshape(1, out_dim)              # (1, out_dim)
    slab = jnp.concatenate([wzT, wx, b], axis=0).astype(jnp.float32)
    out_pad = ((out_dim + _LANE - 1) // _LANE) * _LANE
    if out_pad != out_dim:
        slab = jnp.pad(slab, ((0, 0), (0, out_pad - out_dim)))
    return slab


@functools.partial(jax.jit, static_argnames=("out_dim",))
def unlinear_predictor_forward(x_scalar, z, packed, out_dim):
    """Single-sample forward matching the PyTorch module: scalar input, z (1, emb)."""
    emb_dim = packed.shape[0] - 2
    out_pad = packed.shape[1]
    x = jnp.reshape(x_scalar, (1, 1)).astype(jnp.float32)     # input.view(1,1).float()
    z2 = jnp.reshape(z, (1, emb_dim)).astype(jnp.float32)     # z.float()
    # Fold x and the constant 1 into two extra lanes of z.
    zx = jnp.concatenate([z2, x, jnp.ones((1, 1), jnp.float32)], axis=-1)  # (1, emb+2)

    cost = pl.CostEstimate(
        flops=2 * (emb_dim + 2) * out_pad,
        transcendentals=0,
        bytes_accessed=4 * ((emb_dim + 2) + (emb_dim + 2) * out_pad + out_pad),
    )
    out = pl.pallas_call(
        _fused_linear_kernel,
        out_shape=jax.ShapeDtypeStruct((1, out_pad), jnp.float32),
        in_specs=[
            pl.BlockSpec(memory_space=pltpu.MemorySpace.VMEM),   # [z, x, 1]
            pl.BlockSpec(memory_space=pltpu.MemorySpace.VMEM),   # packed [WzT; wx; b]
        ],
        out_specs=pl.BlockSpec(memory_space=pltpu.MemorySpace.VMEM),
        cost_estimate=cost,
    )(zx, packed)
    return out[:, :out_dim]


@functools.partial(jax.jit, static_argnames=("out_dim", "block_b"))
def unlinear_predictor_batched(x, z, packed, out_dim, block_b=128):
    """Batched variant (amortizes per-call launch/DMA cost): x (B,), z (B, emb)."""
    B, emb_dim = z.shape
    assert packed.shape[0] == emb_dim + 2
    out_pad = packed.shape[1]

    x2 = jnp.reshape(x, (B, 1)).astype(jnp.float32)
    z2 = z.astype(jnp.float32)
    zx = jnp.concatenate([z2, x2, jnp.ones((B, 1), jnp.float32)], axis=-1)  # (B, emb+2)

    bm = min(block_b, ((B + _SUBLANE - 1) // _SUBLANE) * _SUBLANE)
    b_pad = ((B + bm - 1) // bm) * bm
    if b_pad != B:
        zx = jnp.pad(zx, ((0, b_pad - B), (0, 0)))   # padded rows have x=z=1lane=0 -> output 0

    cost = pl.CostEstimate(
        flops=2 * b_pad * (emb_dim + 2) * out_pad,
        transcendentals=0,
        bytes_accessed=4 * (b_pad * (emb_dim + 2)
                            + (emb_dim + 2) * out_pad
                            + b_pad * out_pad),
    )
    out = pl.pallas_call(
        _fused_linear_kernel,
        out_shape=jax.ShapeDtypeStruct((b_pad, out_pad), jnp.float32),
        grid=(b_pad // bm,),
        in_specs=[
            pl.BlockSpec((bm, emb_dim + 2), lambda i: (i, 0)),
            pl.BlockSpec((emb_dim + 2, out_pad), lambda i: (0, 0)),
        ],
        out_specs=pl.BlockSpec((bm, out_pad), lambda i: (i, 0)),
        compiler_params=pltpu.CompilerParams(dimension_semantics=("parallel",)),
        cost_estimate=cost,
    )(zx, packed)
    return out[:B, :out_dim]


if __name__ == "__main__":
    # Module hyperparameters (in_dim is effectively 1 given input.view(1,1)).
    in_dim, emb_dim, out_dim = 1, 32, 16

    key = jax.random.PRNGKey(0)
    k_in, k_z, k_w, k_b, k_xb, k_zb = jax.random.split(key, 6)

    # Deterministic synthetic parameters (PyTorch Linear-style uniform init range).
    fan_in = in_dim + emb_dim
    bound = 1.0 / (fan_in ** 0.5)
    weight = jax.random.uniform(k_w, (out_dim, fan_in), jnp.float32, -bound, bound)
    bias = jax.random.uniform(k_b, (out_dim,), jnp.float32, -bound, bound)

    # One-time parameter packing (hoisted out of the per-call path).
    packed = pack_unlinear_params(weight, bias)

    # --- single-sample path (exact PyTorch-module semantics) ---
    x_scalar = jax.random.normal(k_in, ())                   # scalar "input"
    z = jax.random.normal(k_z, (1, emb_dim), jnp.float32)    # latent z

    out = unlinear_predictor_forward(x_scalar, z, packed, out_dim=out_dim)
    out = jax.block_until_ready(out)

    xz = jnp.concatenate(
        [jnp.reshape(x_scalar, (1, 1)).astype(jnp.float32), z.astype(jnp.float32)],
        axis=-1,
    )
    ref = xz @ weight.T + bias
    assert out.shape == (1, out_dim)
    assert jnp.allclose(out, ref, atol=1e-5, rtol=1e-5)

    # --- batched variant (amortizes launch/DMA overhead across many calls) ---
    B = 4
    xb = jax.random.normal(k_xb, (B,), jnp.float32)
    zb = jax.random.normal(k_zb, (B, emb_dim), jnp.float32)
    outb = unlinear_predictor_batched(xb, zb, packed, out_dim=out_dim)
    outb = jax.block_until_ready(outb)

    refb = jnp.concatenate([xb[:, None], zb], axis=-1) @ weight.T + bias
    assert outb.shape == (B, out_dim)
    assert jnp.allclose(outb, refb, atol=1e-5, rtol=1e-5)

    print("KERNEL_OK")
</pallas_src>

<mosaic_0001>
module attributes {stable_mosaic.version = 11 : i64} {
  func.func @_fused_linear_kernel(%arg0: memref<1x34xf32, #tpu.memory_space<vmem>>, %arg1: memref<34x128xf32, #tpu.memory_space<vmem>>, %arg2: memref<1x128xf32, #tpu.memory_space<vmem>>) attributes {dimension_semantics = [], scalar_prefetch = 0 : i64, scratch_operands = 0 : i64, tpu.core_type = #tpu.core_type<tc>} {
    %c0 = arith.constant 0 : index
    %c0_0 = arith.constant 0 : index
    %0 = vector.load %arg0[%c0, %c0_0] : memref<1x34xf32, #tpu.memory_space<vmem>>, vector<1x34xf32>
    %c0_1 = arith.constant 0 : index
    %c0_2 = arith.constant 0 : index
    %1 = vector.load %arg1[%c0_1, %c0_2] : memref<34x128xf32, #tpu.memory_space<vmem>>, vector<34x128xf32>
    %cst = arith.constant dense<0.000000e+00> : vector<1x128xf32>
    %2 = tpu.matmul %0, %1, %cst {dimension_numbers = #tpu.dot_dimension_numbers<[1], [0], [0], [1], [0, 0, 1, 1], [], []>} : vector<1x34xf32>, vector<34x128xf32>, vector<1x128xf32> -> vector<1x128xf32>
    %c0_3 = arith.constant 0 : index
    %c0_4 = arith.constant 0 : index
    %3 = vector.load %arg2[%c0_3, %c0_4] : memref<1x128xf32, #tpu.memory_space<vmem>>, vector<1x128xf32>
    tpu.vector_store %arg2[%c0_3, %c0_4], %2 {strides = array<i32>} : memref<1x128xf32, #tpu.memory_space<vmem>>, vector<1x128xf32>,
    return
  }
}

</mosaic_0001>

<bundles_post_ra>
// kernel: unlinear_predictor_forward.1
= control target key start
LH: loop header
LB: loop body
LE: loop exit
PB: predicated region body
PF: predicated region fallthrough
CT: control target
= control target key end

     0   :  { %7 = vsyncpa [#allocation3], 0  ;;  %s257_s0 = inlined_call_operand.vmem [shape: f32[1,34], index: 0, kind: input, shape index: {}]   ;;  %s258_s1 = inlined_call_operand.hbm [shape: f32[34,128], index: 1, kind: input, shape index: {}]   ;;  %s259_s2 = inlined_call_operand.hbm [shape: f32[1,128], index: 2, kind: output, shape index: {}]  }
   0x1   :  { %8 = vsyncpa [#allocation4], 0  ;;  %s208_s9 = smov [#allocation2]   ;;  %s160_s13 = scalar_lea.hbm %s258_s1, 640 }
   0x2   :  { %s16_s10 = sshll.u32 %s208_s9, 4  ;;  %p161_p0 = scmp.ne.s32.totalorder %s258_s1, %s160_s13  ;;  %s17_s10 = int_to_ptr.vmem [resolvable:$true] %s16_s10 }
   0x3   :  { %p164_p1 = scmp.lt.u32.totalorder %s160_s13, %s258_s1 }
   0x5   :  { %p166_p2 = pnand %p164_p1, %p161_p0 }
   0x7   :  { %169 = shalt.err (!%p166_p2)
}
   0x8   :  { %s170_s18 = scalar_lea.vmem %s17_s10, 640  ;;  %p175_p4 = scmp.lt.s32.totalorder %s17_s10, %s17_s10 }
   0x9   :  { %p171_p3 = scmp.ne.s32.totalorder %s17_s10, %s170_s18  ;;  %p176_p5 = scmp.lt.s32.totalorder %s170_s18, %s170_s18 }
   0xb   :  { %p177_p6 = por %p176_p5, %p175_p4 }
   0xd   :  { %p178_p7 = pnand %p177_p6, %p171_p3 }
   0xf   :  { %181 = shalt.err (!%p178_p7)
}
  0x10   :  { %s209_s19 = smov 128   ;;  %s210_s20 = smov 8  }
  0x11   :  { %22 = dma.hbm_to_vmem [thread:$0]  %s258_s1, 640, %s17_s10, [#allocation3], %s209_s19, %s209_s19, %s210_s20  }
  0x12   :  { %204 = dma.done.wait [#allocation3], 640  }
  0x13   :  { %205 = vsyncadd [#allocation3], 4294966656  ;;  %v211_v0 = vmov 0.0|0.0   ;;  %vm212_vm0 = vmmov 0   ;;  %v213_v1 = vmov 0.0   ;;  %v27_v2 = vld [vmem:[#allocation2] sm:$0xff] }
  0x14   :  { %147 = vmatprep.subr.bf16.mxu0 %v211_v0  ;;  %144 = vmatprep.mubr.msk.f32.mxu0 %vm212_vm0, %v213_v1  ;;  %v28_v3 = vld [vmem:[#allocation2 + $0x8] sm:$0xff]  ;;  %v29_v4 = vld [vmem:[#allocation2 + $0x10] sm:$0xff]  ;;  %v30_v6 = vld [vmem:[#allocation2 + $0x18] sm:$0xff]  ;;  %vm36_vm1 = vcmask 1041408   ;;  %vm32_vm2 = vcmask 277504   ;;  %s214_s24 = smov [#allocation5]  }
  0x15   :  { %v148_v5 = vpack.c.bf16 %v28_v3, %v27_v2  ;;  %v151_v7 = vpack.c.bf16 %v30_v6, %v29_v4  ;;  %v31_v8 = vld [vmem:[#allocation2 + $0x20] sm:$0x3]  ;;  %s117_s25 = sshll.u32 %s214_s24, 4  ;;  %s118_s25 = int_to_ptr.vmem [resolvable:$true] %s117_s25 }
  0x16   :  { %v26_v9 = vld [vmem:[%s257_s0] sm:$0x1]  ;;  %s182_s26 = scalar_lea.vmem %s118_s25, 16  ;;  %s186_s27 = scalar_lea.vmem %s118_s25, 32 }
  0x17   :  { %149 = vmatpush3.bf16.msra.mxu0 %v148_v5  ;;  %p183_p8 = scmp.ne.s32.totalorder %s118_s25, %s182_s26  ;;  %p187_p9 = scmp.lt.s32.totalorder %s118_s25, %s118_s25 }
  0x18   :  { %150 = vmatprep.subr.bf16.mxu0 %v211_v0  ;;  %p188_p10 = scmp.lt.s32.totalorder %s186_s27, %s182_s26 }
  0x1a   :  { %p189_p11 = por %p188_p10, %p187_p9 }
  0x1b   :  { %152 = vmatpush3.bf16.msra.mxu0 %v151_v7 }
  0x1c   :  { %142 = vmatprep.subr.mxu0 %v213_v1  ;;  %p190_p12 = pnand %p189_p11, %p183_p8 }
  0x1f   :  { %143 = vmatpush3.msk.msra.mxu0 %vm36_vm1, %v31_v8 }
  0x20   :  { %145 = vmatmul.mubr.msk.f32.vlgmr.msra.gmra.mrb[0].mxu0 %vm32_vm2, %v26_v9 }
  0xf3   :  { %v106_v10 = vpop.f32.mrb[0].mxu0 }
  0xf4   :  { %110 = vst [vmem:[#allocation5] sm:$0x1] %v106_v10  ;;  %v146_v11 = vpop.f32.mrb[1].mxu0 }
  0xf5   :  { %193 = shalt.err (!%p190_p12)
}
  0xf6   :  { %s194_s0 = scalar_lea.hbm %s259_s2, 16 }
  0xf7   :  { %p195_p13 = scmp.ne.s32.totalorder %s259_s2, %s194_s0  ;;  %p198_p0 = scmp.lt.u32.totalorder %s194_s0, %s259_s2 }
  0xf9   :  { %p200_p1 = pnand %p198_p0, %p195_p13 }
  0xfb   :  { %203 = shalt.err (!%p200_p1)
}
  0xfc   :  { %120 = dma.vmem_to_hbm [thread:$0]  %s118_s25, 16, %s259_s2, [#allocation4]  }
  0xfd   :  { %206 = dma.done.wait [#allocation4], 16  }
  0xfe   :  { %207 = vsyncadd [#allocation4], 4294967280 }
  0xff   :  { %124 = vsyncpa [#allocation3], 1 }
 0x100   :  { %125 = vsyncpa [#allocation4], 1 }

</bundles_post_ra>
